<compile_context>
chip_gen: v7x
topology: tpu7x:2x2x1
jax: 0.10.0
libtpu: 0.0.40
codegen_flags: <defaults>
</compile_context>

<pallas_src>
import functools

import jax
import jax.numpy as jnp
from jax.experimental import pallas as pl
from jax.experimental.pallas import tpu as pltpu


def _round_up(x, m):
    return (x + m - 1) // m * m


def _auto_tile_rows(n, c, itemsize, target_bytes=4 << 20,
                    vmem_budget_bytes=28 << 20):
    """Pick TN so one log-prob buffer is ~target_bytes, capped by VMEM budget."""
    logp_row = c * itemsize
    # (TN, 1) int32 target blocks are lane-padded to 128 in VMEM -> 512 B/row.
    tgt_row = 128 * 4
    tn = _round_up(max(target_bytes // logp_row, 1), 8)
    cap = (vmem_budget_bytes // 2) // (logp_row + tgt_row)  # double-buffered
    cap = max(cap // 8 * 8, 8)
    tn = max(min(tn, cap), 8)
    tn = min(tn, _round_up(n, 8))
    return tn


def _elbo_partial_kernel(logp_ref, tgt_ref, out_ref, *, total_n,
                         tiles_per_core):
    ci = pl.program_id(0)   # core slot ("parallel" axis)
    ii = pl.program_id(1)   # per-core tile index ("arbitrary" reduction axis)

    @pl.when(ii == 0)
    def _init():
        out_ref[...] = jnp.zeros_like(out_ref)

    logp = logp_ref[...].astype(jnp.float32)       # (TN, C); upcast if bf16
    tgt = tgt_ref[...]                             # (TN, 1) int32
    tn, c = logp.shape

    # Logical (unclamped) tile index; rows past N -- including whole tiles on
    # the last core whose block index was clamped in the index_map -- mask to 0.
    tile_idx = ci * tiles_per_core + ii
    row = jax.lax.broadcasted_iota(jnp.int32, (tn, 1), dimension=0)
    row_valid = (row + tile_idx * tn) < total_n    # (TN, 1) bool

    # One-hot gather via lane-iota compare + select (VPU only).
    col = jax.lax.broadcasted_iota(jnp.int32, (tn, c), dimension=1)
    sel = (col == tgt) & row_valid
    picked = jnp.where(sel, logp, 0.0)             # (TN, C)

    # Per-tile partial reduction over the non-vreg axis only:
    # (TN, C) -> (TN//8, 8, C) -> sum(axis=0) is plain vreg adds on the VPU;
    # no cross-lane XLU work in the hot loop.  The (1, 8, C) output block is
    # resident in VMEM across the reduction axis (accumulator pattern).
    partial = jnp.sum(picked.reshape(tn // 8, 8, c), axis=0)   # (8, C)
    out_ref[...] += partial[None]


def elbo(log_probs, target, kl, beta, *, train_size, block_rows=None,
         num_cores=2):
    """log_probs: (N, C) float32/bfloat16 log-probabilities; target: (N,) ints.
    kl, beta: scalars. Returns scalar float32 ELBO loss."""
    n, c = log_probs.shape
    itemsize = jnp.dtype(log_probs.dtype).itemsize

    if block_rows is None:
        tn = _auto_tile_rows(n, c, itemsize)
    else:
        tn = max(min(_round_up(block_rows, 8), _round_up(n, 8)), 8)

    total_tiles = pl.cdiv(n, tn)
    # Don't over-split tiny inputs; on 1-TC chips extra core slots just
    # serialize, so clamping by tile count is the only useful guard.
    num_cores = max(1, min(num_cores, total_tiles))
    tiles_per_core = pl.cdiv(total_tiles, num_cores)
    last_tile = total_tiles - 1

    tgt2d = target.astype(jnp.int32).reshape(n, 1)

    def tile_map(ci, ii):
        # Clamp so the DMA never reads a block that is entirely past the end;
        # the in-kernel row_valid mask zeroes any such tile's contribution.
        return (jnp.minimum(ci * tiles_per_core + ii, last_tile), 0)

    kernel = functools.partial(
        _elbo_partial_kernel, total_n=n, tiles_per_core=tiles_per_core)

    # VMEM footprint: double-buffered (tn, c) log-probs + lane-padded (tn, 1)
    # targets + per-core (1, 8, c) output block.
    footprint = 2 * tn * (c * itemsize + 512) + 2 * 8 * max(c, 128) * 4
    vmem_limit = int(min(max(footprint + (8 << 20), 16 << 20), 100 << 20))

    cost = pl.CostEstimate(
        flops=2 * n * c,
        transcendentals=0,
        bytes_accessed=n * c * itemsize + n * 4 + num_cores * 8 * c * 4,
    )

    partials = pl.pallas_call(
        kernel,
        out_shape=jax.ShapeDtypeStruct((num_cores, 8, c), jnp.float32),
        grid_spec=pltpu.PrefetchScalarGridSpec(
            num_scalar_prefetch=0,
            grid=(num_cores, tiles_per_core),
            in_specs=[
                pl.BlockSpec((tn, c), tile_map),      # log_probs tile
                pl.BlockSpec((tn, 1), tile_map),      # target tile
            ],
            # Per-core partial-sum slot; index depends only on the parallel
            # axis so each TensorCore owns a disjoint output block.
            out_specs=pl.BlockSpec((1, 8, c), lambda ci, ii: (ci, 0, 0)),
        ),
        compiler_params=pltpu.CompilerParams(
            dimension_semantics=("parallel", "arbitrary"),
            vmem_limit_bytes=vmem_limit,
        ),
        cost_estimate=cost,
    )(log_probs, tgt2d)

    # Tiny scalar epilogue in XLA: collapse per-core partials, normalize by the
    # TOTAL N, then train_size scaling + beta * kl.
    total = jnp.sum(partials)
    nll = -(total / jnp.float32(n))                 # nll_loss(reduction='mean')
    return (nll * jnp.float32(train_size)
            + jnp.asarray(beta, jnp.float32) * jnp.asarray(kl, jnp.float32))


if __name__ == "__main__":
    key = jax.random.PRNGKey(0)
    k1, k2 = jax.random.split(key, 2)

    # Small demo shapes; block_rows=16 forces a multi-tile grid with a masked
    # partial tail tile (N=40 is not a multiple of 16) and exercises the
    # 2-core split (core 1 gets a clamped, fully-masked trailing tile).
    N, C = 40, 128
    train_size = 1000.0

    logits = jax.random.normal(k1, (N, C), dtype=jnp.float32)
    log_probs = jax.nn.log_softmax(logits, axis=-1)
    target = jax.random.randint(k2, (N,), 0, C, dtype=jnp.int32)
    kl = jnp.float32(3.7)
    beta = jnp.float32(0.1)

    out = elbo(log_probs, target, kl, beta,
               train_size=train_size, block_rows=16)
    out = jax.block_until_ready(out)

    # Pure-JAX reference of the forward semantics.
    ref_nll = -jnp.mean(log_probs[jnp.arange(N), target])
    ref = ref_nll * train_size + beta * kl
    assert jnp.allclose(out, ref, rtol=1e-5, atol=1e-4), (out, ref)

    print("KERNEL_OK")
</pallas_src>

<mosaic_0001>
module attributes {stable_mosaic.version = 11 : i64} {
  func.func @_elbo_partial_kernel(%arg0: i32, %arg1: i32, %arg2: memref<16x128xf32, #tpu.memory_space<vmem>>, %arg3: memref<16x1xi32, #tpu.memory_space<vmem>>, %arg4: memref<1x8x128xf32, #tpu.memory_space<vmem>>) attributes {dimension_semantics = [#tpu.dimension_semantics<parallel>, #tpu.dimension_semantics<arbitrary>], iteration_bounds = array<i64: 2, 2>, scalar_prefetch = 0 : i64, scratch_operands = 0 : i64, tpu.core_type = #tpu.core_type<tc>, window_params = [{transform_indices = @transform_0, window_bounds = array<i64: 16, 128>}, {transform_indices = @transform_1, window_bounds = array<i64: 16, 1>}, {transform_indices = @transform_2, window_bounds = array<i64: 1, 8, 128>}]} {
    %c0_i32 = arith.constant 0 : i32
    %0 = arith.cmpi eq, %arg1, %c0_i32 : i32
    %1 = arith.extui %0 : i1 to i32
    %c0_i32_0 = arith.constant 0 : i32
    %2 = arith.cmpi ne, %1, %c0_i32_0 : i32
    scf.if %2 {
      %cst_11 = arith.constant 0.000000e+00 : f32
      %26 = vector.broadcast %cst_11 : f32 to vector<1x8x128xf32>
      %c0_12 = arith.constant 0 : index
      %c0_13 = arith.constant 0 : index
      %c0_14 = arith.constant 0 : index
      %27 = vector.load %arg4[%c0_12, %c0_13, %c0_14] : memref<1x8x128xf32, #tpu.memory_space<vmem>>, vector<1x8x128xf32>
      tpu.vector_store %arg4[%c0_12, %c0_13, %c0_14], %26 {strides = array<i32>} : memref<1x8x128xf32, #tpu.memory_space<vmem>>, vector<1x8x128xf32>,
    } else {
    }
    %c0 = arith.constant 0 : index
    %c0_1 = arith.constant 0 : index
    %3 = vector.load %arg2[%c0, %c0_1] : memref<16x128xf32, #tpu.memory_space<vmem>>, vector<16x128xf32>
    %c0_2 = arith.constant 0 : index
    %c0_3 = arith.constant 0 : index
    %4 = vector.load %arg3[%c0_2, %c0_3] : memref<16x1xi32, #tpu.memory_space<vmem>>, vector<16x1xi32>
    %c2_i32 = arith.constant 2 : i32
    %5 = arith.muli %arg0, %c2_i32 : i32
    %6 = arith.addi %5, %arg1 : i32
    %7 = tpu.iota {dimensions = array<i32: 0>} : vector<16x1xi32>
    %c16_i32 = arith.constant 16 : i32
    %8 = arith.muli %6, %c16_i32 : i32
    %9 = vector.broadcast %8 : i32 to vector<16x1xi32>
    %10 = arith.addi %7, %9 : vector<16x1xi32>
    %c40_i32 = arith.constant 40 : i32
    %11 = vector.broadcast %c40_i32 : i32 to vector<16x1xi32>
    %12 = arith.cmpi slt, %10, %11 : vector<16x1xi32>
    %13 = tpu.iota {dimensions = array<i32: 1>} : vector<16x128xi32>
    %14 = vector.broadcast %4 : vector<16x1xi32> to vector<16x128xi32>
    %15 = arith.cmpi eq, %13, %14 : vector<16x128xi32>
    %16 = vector.broadcast %12 : vector<16x1xi1> to vector<16x128xi1>
    %17 = arith.andi %15, %16 : vector<16x128xi1>
    %cst = arith.constant 0.000000e+00 : f32
    %18 = vector.broadcast %cst : f32 to vector<16x128xf32>
    %19 = arith.select %17, %3, %18 : vector<16x128xi1>, vector<16x128xf32>
    %20 = vector.shape_cast %19 : vector<16x128xf32> to vector<2x8x128xf32>
    %cst_4 = arith.constant dense<0.000000e+00> : vector<8x128xf32>
    %21 = vector.multi_reduction <add>, %20, %cst_4 [0] : vector<2x8x128xf32> to vector<8x128xf32>
    %c0_5 = arith.constant 0 : index
    %c0_6 = arith.constant 0 : index
    %c0_7 = arith.constant 0 : index
    %22 = vector.load %arg4[%c0_5, %c0_6, %c0_7] : memref<1x8x128xf32, #tpu.memory_space<vmem>>, vector<1x8x128xf32>
    %23 = vector.shape_cast %21 : vector<8x128xf32> to vector<1x8x128xf32>
    %24 = arith.addf %22, %23 : vector<1x8x128xf32>
    %c0_8 = arith.constant 0 : index
    %c0_9 = arith.constant 0 : index
    %c0_10 = arith.constant 0 : index
    %25 = vector.load %arg4[%c0_8, %c0_9, %c0_10] : memref<1x8x128xf32, #tpu.memory_space<vmem>>, vector<1x8x128xf32>
    tpu.vector_store %arg4[%c0_8, %c0_9, %c0_10], %24 {strides = array<i32>} : memref<1x8x128xf32, #tpu.memory_space<vmem>>, vector<1x8x128xf32>,
    return
  }
  func.func @transform_0(%arg0: i32, %arg1: i32) -> (i32, i32) {
    %c2_i32 = arith.constant 2 : i32
    %0 = arith.muli %arg0, %c2_i32 : i32
    %1 = arith.addi %0, %arg1 : i32
    %c2_i32_0 = arith.constant 2 : i32
    %2 = arith.minsi %1, %c2_i32_0 : i32
    %c0_i32 = arith.constant 0 : i32
    %c0_i32_1 = arith.constant 0 : i32
    return %2, %c0_i32 : i32, i32
  }
  func.func @transform_1(%arg0: i32, %arg1: i32) -> (i32, i32) {
    %c2_i32 = arith.constant 2 : i32
    %0 = arith.muli %arg0, %c2_i32 : i32
    %1 = arith.addi %0, %arg1 : i32
    %c2_i32_0 = arith.constant 2 : i32
    %2 = arith.minsi %1, %c2_i32_0 : i32
    %c0_i32 = arith.constant 0 : i32
    %c0_i32_1 = arith.constant 0 : i32
    return %2, %c0_i32 : i32, i32
  }
  func.func @transform_2(%arg0: i32, %arg1: i32) -> (i32, i32, i32) {
    %c0_i32 = arith.constant 0 : i32
    %c0_i32_0 = arith.constant 0 : i32
    %c0_i32_1 = arith.constant 0 : i32
    return %arg0, %c0_i32, %c0_i32_0 : i32, i32, i32
  }
}

</mosaic_0001>

<bundles_post_ra>
// kernel: tpu_custom_call.1
= control target key start
LH: loop header
LB: loop body
LE: loop exit
PB: predicated region body
PF: predicated region fallthrough
CT: control target
= control target key end

     0   :  { %7 = vsyncpa [#allocation3], 0  ;;  %s769_s0 = inlined_call_operand.vmem [shape: f32[40,128], index: 0, kind: input, shape index: {}]   ;;  %s770_s1 = inlined_call_operand.vmem [shape: s32[40,1], index: 1, kind: input, shape index: {}]   ;;  %s771_s2 = inlined_call_operand.hbm [shape: f32[2,8,128], index: 2, kind: output, shape index: {}]  }
   0x1   :  { %9 = vsyncpa [#allocation3 + $0x1], 0  ;;  %s623_s9 = smov 0   ;;  %s625_s10 = smov 0  }
   0x2   :  { %s627_s11 = smov 0   ;;  %s629_s12 = smov 0  }
   0x3   :  { %s631_s13 = smov 0   ;;  %s633_s14 = smov 0  }
   0x4   :  { %s635_s15 = smov 0   ;;  %s637_s16 = smov 0  }
   0x5 LB: > { %s412_s17 = sadd.s32 4294967295, %s603_s16   ;;  %s413_s18 = sadd.s32 4294967294, %s603_s16   ;;  %s603_s16 = sphi %s637_s16, %s15_s16   ;;  %s599_s15 = sphi %s635_s15, %s780_s15   ;;  %s595_s14 = sphi %s633_s14, %s779_s14   ;;  %s591_s13 = sphi %s631_s13, %s778_s13   ;;  %s587_s12 = sphi %s629_s12, %s777_s12   ;;  %s583_s11 = sphi %s627_s11, %s776_s11   ;;  %s579_s10 = sphi %s625_s10, %s775_s10   ;;  %s575_s9 = sphi %s623_s9, %s774_s9  }
   0x6   : > { %s24_s19 = sadd.s32 1, %s595_s14  ;;  %s27_s20 = sadd.s32 1, %s599_s15 }
   0x7   : > { %p25_p0 = scmp.ge.s32.totalorder %s24_s19, 2  ;;  %p112_p1 = scmp.ne.s32.totalorder %s583_s11, %s579_s10 }
   0x8   : > { %p113_p2 = scmp.eq.s32.totalorder %s412_s17, 3  ;;  %p118_p4 = scmp.ne.s32.totalorder %s579_s10, %s575_s9 }
   0x9   : > { %s782_s19 = smov (%p25_p0, %s24_s19), 0  ;;  %s784_s20 = smov (!%p25_p0, %s27_s20), %s599_s15 }
   0xa   : > { %p672_p3 = por %p113_p2, %p112_p1  ;;  %p29_p5 = scmp.ge.s32.totalorder %s784_s20, 2 }
   0xb   : > { %p119_p6 = scmp.eq.s32.totalorder %s413_s18, 3  ;;  %p420_p7 = scmp.ge.s32.totalorder %s603_s16, 1 }
   0xc   : > { %p187_p8 = scmp.lt.s32.totalorder %s603_s16, 5  ;;  %s786_s20 = smov (%p29_p5, %s784_s20), 0 }
   0xd   : > { %p682_p9 = por %p119_p6, %p118_p4  ;;  %s99_s23 = ssub.s32 %s599_s15, %s786_s20 }
   0xe   : > { %p188_p10 = pnand %p420_p7, %p187_p8  ;;  %s102_s24 = sadd.s32 1, %s583_s11 }
   0xf   : > { %p100_p11 = scmp.eq.s32.totalorder %s99_s23, 0  ;;  %s227_s26 = sand.u32 (!%p188_p10), 1, %s579_s10  }
  0x10   : > { %191 = sbr.rel (%p188_p10) target bundleno = 186 (0xba), region = 28  ;;  %s422_s27 = sshll.u32 (!%p188_p10), %s591_s13, 1 }
  0x11   : > { %s690_s25 = scalar_select %p100_p11, %s583_s11, %s102_s24  }
  0x12   : > { %s421_s28 = sshll.u32 (!%p188_p10), %s227_s26, 3  ;;  %s231_s29 = sadd.s32 (!%p188_p10), %s587_s12, %s422_s27 }
  0x13   : > { %p232_p12 = scmp.lt.s32.totalorder (!%p188_p10), %s231_s29, 2  ;;  %s703_s23 = scalar_lea.vmem (!%p188_p10), [#allocation2], %s421_s28 }
  0x14   : > { %p428_p0 = scmp.ne.s32.totalorder (!%p188_p10), %s587_s12, 0 }
  0x17   : > { %s233_s30 = scalar_select %p232_p12, %s231_s29, 2 }
  0x18   : > { %277 = sbr.rel (%p428_p0) target bundleno = 31 (0x1f), region = 32  ;;  %v605_v0 = vmov (!%p428_p0), 0.0  }
  0x19   : > { %s423_s3 = sshll.u32 %s233_s30, 1  ;;  %278 = vst [vmem:[%s703_s23] sm:$0xff] (!%p428_p0), %v605_v0 }
  0x1a   : > { %p239_p13 = scmp.lt.s32.totalorder %s423_s3, 4 }
  0x1c   : > { %s788_s3 = smov (!%p239_p13, %s423_s3), 4 }
  0x1d   : > { %s424_s4 = sshll.u32 %s788_s3, 3 }
  0x1e   : > { %s242_s7 = scalar_lea.vmem %s769_s0, %s424_s4  ;;  %s264_s18 = scalar_lea.vmem %s770_s1, %s424_s4 }
  0x1f PF: > { %v281_v1 = vld [vmem:[%s264_s18] sm:$0xff]  ;;  %v606_v2 = vmov 0   ;;  %v282_v3 = vld [vmem:[%s264_s18 + $0x8] sm:$0xff]  ;;  %v285_v4 = vlaneseq  ;;  %s430_s24 = sshll.u32 %s231_s29, 4  ;;  %s432_s12 = sshll.u32 %s591_s13, 7 }
  0x20   : > { %508 = vset.pattern.permute.xlu0 %v606_v2  ;;  %v289_v6 = vstv %s430_s24  ;;  %v279_v12 = vld [vmem:[%s242_s7] sm:$0xff]  ;;  %v280_v14 = vld [vmem:[%s242_s7 + $0x8] sm:$0xff]  ;;  %s330_s27 = sshll.u32 %s703_s23, 4  ;;  %s713_s30 = scalar_lea.hbm %s771_s2, %s432_s12  ;;  %s715_s27 = int_to_ptr.vmem [resolvable:$true] %s330_s27 }
  0x21   : > { %297 = vperm.xlu0 %508, %v281_v1   ;;  %v286_v5 = vshrl.u32 %v285_v4, 7  ;;  %v295_v9 = vand.u32 127, %v285_v4  ;;  %v313_v17 = vld [vmem:[%s703_s23] sm:$0xff]  ;;  %s317_s3 = scalar_lea.sflag [#allocation3], %s227_s26  ;;  %s509_s4 = scalar_lea.vmem %s715_s27, 128 }
  0x22   : > { %p510_p1 = scmp.ne.s32.totalorder %s715_s27, %s509_s4  ;;  %s607_s13 = smov [#allocation2]  }
  0x23   : > { %v287_v7 = vadd.s32 8, %v286_v5  ;;  %v290_v8 = vadd.s32 %v289_v6, %v286_v5  ;;  %s513_s5 = sshll.u32 %s607_s13, 4  ;;  %s514_s5 = int_to_ptr.vmem [resolvable:$false] %s513_s5 }
  0x24   : > { %p511_p2 = pnand %p510_p1, %p672_p3  ;;  %s515_s6 = scalar_lea.vmem %s514_s5, 256 }
  0x25   : > { %300 = vperm.xlu0 %508, %v282_v3   ;;  %v291_v10 = vadd.s32 %v289_v6, %v287_v7  ;;  %vm292_vm0 = vcmp.lt.s32.totalorder %v290_v8, 40  ;;  %p516_p5 = scmp.lt.s32.totalorder %s715_s27, %s514_s5  ;;  %p517_p6 = scmp.lt.s32.totalorder %s515_s6, %s509_s4 }
  0x26   : > { %p512_p4 = pneg %p511_p2 }
  0x27   : > { %vm293_vm2 = vcmp.lt.s32.totalorder %v291_v10, 40  ;;  %p518_p7 = por %p517_p6, %p516_p5 }
  0x29   : > { %p519_p8 = pnand %p518_p7, %p512_p4 }
  0xa0   : > { %v298_v11 = vpop.permute.xlu0 %297 }
  0xa1   : > { %vm302_vm1 = vcmp.eq.s32.totalorder %v295_v9, %v298_v11 }
  0xa2   : > { %vm308_vm3 = vmand %vm302_vm1, %vm292_vm0 }
  0xa3   : > { %v310_v15 = vsel %vm308_vm3, %v279_v12, 0.0 }
  0xa4   : > { %v301_v13 = vpop.permute.xlu0 %300 }
  0xa5   : > { %vm303_vm4 = vcmp.eq.s32.totalorder %v295_v9, %v301_v13 }
  0xa6   : > { %vm309_vm5 = vmand %vm303_vm4, %vm293_vm2 }
  0xa7   : > { %v311_v16 = vsel %vm309_vm5, %v280_v14, 0.0 }
  0xa8   : > { %v312_v18 = vadd.f32 %v311_v16, %v310_v15 }
  0xaa   : > { %v314_v19 = vadd.f32 %v313_v17, %v312_v18 }
  0xac   : > { %315 = vst [vmem:[%s703_s23] sm:$0xff] %v314_v19 }
  0xad   : > { %522 = shalt.err (!%p519_p8)
}
  0xae   : > { %s523_s26 = scalar_lea.hbm %s713_s30, 128  ;;  %s527_s17 = scalar_lea.hbm %s771_s2, 256 }
  0xaf   : > { %p524_p10 = scmp.ne.s32.totalorder %s713_s30, %s523_s26  ;;  %p528_p13 = scmp.lt.u32.totalorder %s713_s30, %s771_s2 }
  0xb0   : > { %p529_p0 = scmp.lt.u32.totalorder %s527_s17, %s523_s26  ;;  %p531_p2 = scmp.lt.u32.totalorder %s523_s26, %s713_s30 }
  0xb1   : > { %p525_p11 = pnand %p524_p10, %p672_p3 }
  0xb2   : > { %p530_p1 = por %p529_p0, %p528_p13 }
  0xb3   : > { %p526_p12 = pneg %p525_p11 }
  0xb4   : > { %p532_p4 = por %p531_p2, %p530_p1 }
  0xb6   : > { %p533_p5 = pnand %p532_p4, %p526_p12 }
  0xb8   : > { %536 = shalt.err (!%p533_p5)
}
  0xb9   : > { %435 = dma.vmem_to_hbm [thread:$0]  (%p672_p3), %s715_s27, 128, %s713_s30, %s317_s3  }
  0xba PF: > { %p441_p6 = scmp.ge.s32.totalorder %s603_s16, 2  ;;  %s342_s24 = sand.u32 1, %s575_s9  }
  0xbb   : > { %s343_s12 = scalar_lea.sflag [#allocation3], %s342_s24 }
  0xbc   : > { %p438_p7 = pnand %p441_p6, %p682_p9 }
  0xbe   : > { %570 = dma.done.wait (!%p438_p7), %s343_s12, 128  }
  0xbf   : > { %572 = vsyncadd (!%p438_p7), %s343_s12, 4294967168  ;;  %s15_s16 = sadd.s32 1, %s603_s16   ;;  %s774_s9 = smov %s579_s10 }
  0xc0   : > { %p12_p8 = scmp.ge.s32.totalorder %s15_s16, 6   ;;  %s775_s10 = smov %s583_s11 }
  0xc1   : > { %s776_s11 = smov %s690_s25  ;;  %s777_s12 = smov %s595_s14 }
  0xc2   : > { %s778_s13 = smov %s599_s15  ;;  %s779_s14 = smov %s782_s19 }
  0xc3   : > { %s780_s15 = smov %s786_s20  ;;  %14 = sbr.rel (!%p12_p8) target bundleno = 5 (0x5), region = 70 }
  0xca   :  { %348 = vsyncpa [#allocation3], 1 }
  0xcb   :  { %350 = vsyncpa [#allocation3 + $0x1], 1 }

</bundles_post_ra>
